<compile_context>
chip_gen: v5e
topology: v5e:2x2
jax: 0.10.0
libtpu: 0.0.40
codegen_flags: <defaults>
</compile_context>

<pallas_src>
import functools
import math

import jax
import jax.numpy as jnp
from jax.experimental import pallas as pl
from jax.experimental.pallas import tpu as pltpu


def _round_up(x, m):
    return ((x + m - 1) // m) * m


def _cdiv(a, b):
    return -(-a // b)


def _lcm(a, b):
    return a * b // math.gcd(a, b)


def _pack_factor(*dims):
    """Smallest R such that R*d is a multiple of 128 lanes for every d."""
    r = 1
    for d in dims:
        r = _lcm(r, 128 // math.gcd(d, 128))
    return r


def embed_fc_kernel(x_ref, w1_ref, b1_ref, w2_ref, b2_ref, out_ref):
    # x_ref : (TM, R*input_dim)          one packed row tile (moves with grid)
    # w1_ref: (R*input_dim, R*emb_dim)   block-diagonal weights, VMEM-resident
    # b1_ref: (1, R*emb_dim)             f32 bias (tiled R times)
    # w2_ref: (R*emb_dim, R*emb_dim)     block-diagonal weights, VMEM-resident
    # b2_ref: (1, R*emb_dim)             f32 bias (tiled R times)
    # out_ref: (TM, R*emb_dim)
    x = x_ref[...].astype(w1_ref.dtype)  # bf16 cast on VPU; kernel is mem-bound

    # First linear (MXU, f32 accumulate) + bias + ReLU in f32.
    h = jnp.dot(x, w1_ref[...], preferred_element_type=jnp.float32) + b1_ref[...]
    h = jnp.maximum(h, 0.0)

    # Second linear (MXU, f32 accumulate) + bias.
    y = jnp.dot(h.astype(w2_ref.dtype), w2_ref[...],
                preferred_element_type=jnp.float32) + b2_ref[...]
    out_ref[...] = y.astype(out_ref.dtype)


@functools.partial(
    jax.jit,
    static_argnames=("input_dim", "emb_dim", "compute_dtype", "row_tile"))
def embed_fc(x, w1, b1, w2, b2, *, input_dim, emb_dim,
             compute_dtype=jnp.bfloat16, row_tile=2048):
    """Forward pass of EmbedFC.  x may have any shape whose total size is a
    multiple of input_dim (mirrors x.view(-1, input_dim)).  Weights are stored
    as [in_features, out_features] so the kernel computes y = x @ W + b."""
    x2d = x.reshape(-1, input_dim)
    batch = x2d.shape[0]
    out_dtype = x.dtype

    # ---- Lane-dense row packing -------------------------------------------
    # R logical rows per physical row so both the packed input width and the
    # packed output width are multiples of 128 lanes (unmasked vld/vst, full
    # MXU columns).  Falls back to R=1 when the block-diagonal weights would
    # stop being "tiny".
    R = _pack_factor(input_dim, emb_dim)
    if R * R * (input_dim * emb_dim + emb_dim * emb_dim) * 2 > 8 * 1024 * 1024:
        R = 1

    # ---- Even-split tile selection + minimal ragged padding ---------------
    packed_rows = _cdiv(batch, R)
    num_tiles = max(1, _cdiv(packed_rows, row_tile))
    if num_tiles == 1 and packed_rows > 8:
        num_tiles = 2            # keep grid >= 2 so both v7x TCs get row tiles
    tm = _round_up(_cdiv(packed_rows, num_tiles), 8)   # multiple of 8 sublanes
    padded_packed = tm * num_tiles
    padded_batch = padded_packed * R
    if padded_batch != batch:
        x2d = jnp.pad(x2d, ((0, padded_batch - batch), (0, 0)))
    xp = x2d.reshape(padded_packed, R * input_dim)     # pure view (row-major)

    # ---- Block-diagonal weights & tiled biases (tiny; fused under jit) -----
    eye = jnp.eye(R, dtype=jnp.float32)
    w1_bd = jnp.einsum("rs,ij->risj", eye, w1.astype(jnp.float32)).reshape(
        R * input_dim, R * emb_dim).astype(compute_dtype)
    w2_bd = jnp.einsum("rs,ij->risj", eye, w2.astype(jnp.float32)).reshape(
        R * emb_dim, R * emb_dim).astype(compute_dtype)
    b1_t = jnp.tile(b1.reshape(1, emb_dim).astype(jnp.float32), (1, R))
    b2_t = jnp.tile(b2.reshape(1, emb_dim).astype(jnp.float32), (1, R))

    # ---- Accurate (advisory) cost estimate ---------------------------------
    w_bytes = (w1_bd.size + w2_bd.size) * jnp.dtype(compute_dtype).itemsize
    cost = pl.CostEstimate(
        flops=2 * padded_packed * ((R * input_dim) * (R * emb_dim)
                                   + (R * emb_dim) * (R * emb_dim)),
        transcendentals=0,
        bytes_accessed=(xp.size * jnp.dtype(xp.dtype).itemsize
                        + w_bytes
                        + (b1_t.size + b2_t.size) * 4
                        + padded_packed * R * emb_dim
                        * jnp.dtype(out_dtype).itemsize),
    )

    out = pl.pallas_call(
        embed_fc_kernel,
        out_shape=jax.ShapeDtypeStruct((padded_packed, R * emb_dim), out_dtype),
        grid_spec=pltpu.PrefetchScalarGridSpec(
            num_scalar_prefetch=0,
            grid=(num_tiles,),
            in_specs=[
                pl.BlockSpec((tm, R * input_dim), lambda i: (i, 0)),
                # Constant index_map -> no re-DMA across grid steps; weights
                # and biases stay resident in VMEM.
                pl.BlockSpec((R * input_dim, R * emb_dim), lambda i: (0, 0)),
                pl.BlockSpec((1, R * emb_dim), lambda i: (0, 0)),
                pl.BlockSpec((R * emb_dim, R * emb_dim), lambda i: (0, 0)),
                pl.BlockSpec((1, R * emb_dim), lambda i: (0, 0)),
            ],
            out_specs=pl.BlockSpec((tm, R * emb_dim), lambda i: (i, 0)),
        ),
        compiler_params=pltpu.CompilerParams(
            # Independent row tiles: megacore sharding on v7x, no-op on
            # single-TC v5e/v6e.
            dimension_semantics=("parallel",),
            vmem_limit_bytes=32 * 1024 * 1024,   # explicit: v5e default is 16 MiB
        ),
        cost_estimate=cost,
    )(xp, w1_bd, b1_t, w2_bd, b2_t)

    # Unpack rows (pure views), drop padding, match PyTorch .view(-1, E, 1, 1).
    out = out.reshape(padded_batch, emb_dim)[:batch]
    return out.reshape(-1, emb_dim, 1, 1)


if __name__ == "__main__":
    input_dim = 16
    emb_dim = 32
    batch = 8

    key = jax.random.PRNGKey(0)
    kx, kw1, kb1, kw2, kb2 = jax.random.split(key, 5)

    # Deterministic synthetic parameters (nn.Linear shapes, stored transposed
    # as [in, out] for the kernel).
    x = jax.random.normal(kx, (batch, input_dim), dtype=jnp.float32)
    w1 = jax.random.normal(kw1, (input_dim, emb_dim), dtype=jnp.float32) * 0.1
    b1 = jax.random.normal(kb1, (emb_dim,), dtype=jnp.float32) * 0.1
    w2 = jax.random.normal(kw2, (emb_dim, emb_dim), dtype=jnp.float32) * 0.1
    b2 = jax.random.normal(kb2, (emb_dim,), dtype=jnp.float32) * 0.1

    out = embed_fc(x, w1, b1, w2, b2, input_dim=input_dim, emb_dim=emb_dim)
    out = jax.block_until_ready(out)

    # Pure-JAX f32 reference (kernel uses bf16 matmul operands -> loose tol).
    h_ref = jnp.maximum(x.reshape(-1, input_dim) @ w1 + b1, 0.0)
    ref = (h_ref @ w2 + b2).reshape(-1, emb_dim, 1, 1)
    assert out.shape == (batch, emb_dim, 1, 1), out.shape
    assert jnp.allclose(out, ref, atol=2e-2, rtol=2e-2), \
        float(jnp.max(jnp.abs(out - ref)))

    print("KERNEL_OK")
</pallas_src>

<mosaic_0001>
module attributes {stable_mosaic.version = 11 : i64} {
  func.func @embed_fc_kernel(%arg0: i32, %arg1: memref<8x128xf32, #tpu.memory_space<vmem>>, %arg2: memref<128x256xbf16, #tpu.memory_space<vmem>>, %arg3: memref<1x256xf32, #tpu.memory_space<vmem>>, %arg4: memref<256x256xbf16, #tpu.memory_space<vmem>>, %arg5: memref<1x256xf32, #tpu.memory_space<vmem>>, %arg6: memref<8x256xf32, #tpu.memory_space<vmem>>) attributes {dimension_semantics = [#tpu.dimension_semantics<parallel>], iteration_bounds = array<i64: 1>, scalar_prefetch = 0 : i64, scratch_operands = 0 : i64, tpu.core_type = #tpu.core_type<tc>, window_params = [{transform_indices = @transform_0, window_bounds = array<i64: 8, 128>}, {pipeline_mode = #tpu.pipeline_mode<synchronous>, transform_indices = @transform_1, window_bounds = array<i64: 128, 256>}, {pipeline_mode = #tpu.pipeline_mode<synchronous>, transform_indices = @transform_2, window_bounds = array<i64: 1, 256>}, {pipeline_mode = #tpu.pipeline_mode<synchronous>, transform_indices = @transform_3, window_bounds = array<i64: 256, 256>}, {pipeline_mode = #tpu.pipeline_mode<synchronous>, transform_indices = @transform_4, window_bounds = array<i64: 1, 256>}, {transform_indices = @transform_5, window_bounds = array<i64: 8, 256>}]} {
    %c0 = arith.constant 0 : index
    %c0_0 = arith.constant 0 : index
    %0 = vector.load %arg1[%c0, %c0_0] : memref<8x128xf32, #tpu.memory_space<vmem>>, vector<8x128xf32>
    %1 = arith.truncf %0 : vector<8x128xf32> to vector<8x128xbf16>
    %c0_1 = arith.constant 0 : index
    %c0_2 = arith.constant 0 : index
    %2 = vector.load %arg2[%c0_1, %c0_2] : memref<128x256xbf16, #tpu.memory_space<vmem>>, vector<128x256xbf16>
    %cst = arith.constant dense<0.000000e+00> : vector<8x256xf32>
    %3 = tpu.matmul %1, %2, %cst {dimension_numbers = #tpu.dot_dimension_numbers<[1], [0], [0], [1], [0, 0, 1, 1], [], []>} : vector<8x128xbf16>, vector<128x256xbf16>, vector<8x256xf32> -> vector<8x256xf32>
    %c0_3 = arith.constant 0 : index
    %c0_4 = arith.constant 0 : index
    %4 = vector.load %arg3[%c0_3, %c0_4] : memref<1x256xf32, #tpu.memory_space<vmem>>, vector<1x256xf32>
    %5 = vector.broadcast %4 : vector<1x256xf32> to vector<8x256xf32>
    %6 = arith.addf %3, %5 : vector<8x256xf32>
    %cst_5 = arith.constant 0.000000e+00 : f32
    %7 = vector.broadcast %cst_5 : f32 to vector<8x256xf32>
    %8 = arith.maximumf %6, %7 : vector<8x256xf32>
    %9 = arith.truncf %8 : vector<8x256xf32> to vector<8x256xbf16>
    %c0_6 = arith.constant 0 : index
    %c0_7 = arith.constant 0 : index
    %10 = vector.load %arg4[%c0_6, %c0_7] : memref<256x256xbf16, #tpu.memory_space<vmem>>, vector<256x256xbf16>
    %cst_8 = arith.constant dense<0.000000e+00> : vector<8x256xf32>
    %11 = tpu.matmul %9, %10, %cst_8 {dimension_numbers = #tpu.dot_dimension_numbers<[1], [0], [0], [1], [0, 0, 1, 1], [], []>} : vector<8x256xbf16>, vector<256x256xbf16>, vector<8x256xf32> -> vector<8x256xf32>
    %c0_9 = arith.constant 0 : index
    %c0_10 = arith.constant 0 : index
    %12 = vector.load %arg5[%c0_9, %c0_10] : memref<1x256xf32, #tpu.memory_space<vmem>>, vector<1x256xf32>
    %13 = vector.broadcast %12 : vector<1x256xf32> to vector<8x256xf32>
    %14 = arith.addf %11, %13 : vector<8x256xf32>
    %c0_11 = arith.constant 0 : index
    %c0_12 = arith.constant 0 : index
    %15 = vector.load %arg6[%c0_11, %c0_12] : memref<8x256xf32, #tpu.memory_space<vmem>>, vector<8x256xf32>
    tpu.vector_store %arg6[%c0_11, %c0_12], %14 {strides = array<i32>} : memref<8x256xf32, #tpu.memory_space<vmem>>, vector<8x256xf32>,
    return
  }
  func.func @transform_0(%arg0: i32) -> (i32, i32) {
    %c0_i32 = arith.constant 0 : i32
    %c0_i32_0 = arith.constant 0 : i32
    return %arg0, %c0_i32 : i32, i32
  }
  func.func @transform_1(%arg0: i32) -> (i32, i32) {
    %c0_i32 = arith.constant 0 : i32
    %c0_i32_0 = arith.constant 0 : i32
    %c0_i32_1 = arith.constant 0 : i32
    return %c0_i32, %c0_i32_0 : i32, i32
  }
  func.func @transform_2(%arg0: i32) -> (i32, i32) {
    %c0_i32 = arith.constant 0 : i32
    %c0_i32_0 = arith.constant 0 : i32
    %c0_i32_1 = arith.constant 0 : i32
    return %c0_i32, %c0_i32_0 : i32, i32
  }
  func.func @transform_3(%arg0: i32) -> (i32, i32) {
    %c0_i32 = arith.constant 0 : i32
    %c0_i32_0 = arith.constant 0 : i32
    %c0_i32_1 = arith.constant 0 : i32
    return %c0_i32, %c0_i32_0 : i32, i32
  }
  func.func @transform_4(%arg0: i32) -> (i32, i32) {
    %c0_i32 = arith.constant 0 : i32
    %c0_i32_0 = arith.constant 0 : i32
    %c0_i32_1 = arith.constant 0 : i32
    return %c0_i32, %c0_i32_0 : i32, i32
  }
  func.func @transform_5(%arg0: i32) -> (i32, i32) {
    %c0_i32 = arith.constant 0 : i32
    %c0_i32_0 = arith.constant 0 : i32
    return %arg0, %c0_i32 : i32, i32
  }
}

</mosaic_0001>

<bundles_post_ra>
// kernel: embed_fc.1
= control target key start
LH: loop header
LB: loop body
LE: loop exit
PB: predicated region body
PF: predicated region fallthrough
CT: control target
= control target key end

     0   :  { %s983_s1 = inlined_call_operand.vmem [shape: bf16[128,256], index: 1, kind: input, shape index: {}]   ;;  %s984_s3 = inlined_call_operand.vmem [shape: bf16[256,256], index: 3, kind: input, shape index: {}]   ;;  %s985_s0 = inlined_call_operand.vmem [shape: f32[8,128], index: 0, kind: input, shape index: {}]   ;;  %s986_s2 = inlined_call_operand.vmem [shape: f32[1,256], index: 2, kind: input, shape index: {}]   ;;  %s987_s4 = inlined_call_operand.vmem [shape: f32[1,256], index: 4, kind: input, shape index: {}]   ;;  %s988_s5 = inlined_call_operand.vmem [shape: f32[8,256], index: 5, kind: output, shape index: {}]  }
   0x1   :  { %v468_v0 = vld [vmem:[%s983_s1 + $0x70] sm:$0xf]  ;;  %v617_v1 = vld [vmem:[%s983_s1 + $0x74] sm:$0xf0]  ;;  %v616_v2 = vld [vmem:[%s983_s1 + $0x74] sm:$0xf] }
   0x2   :  { %v469_v3 = vor.u32 %v617_v1, %v468_v0  ;;  %v470_v4 = vld [vmem:[%s983_s1 + $0x78] sm:$0xf0]  ;;  %v460_v5 = vld [vmem:[%s983_s1 + $0x60] sm:$0xf]  ;;  %v615_v6 = vld [vmem:[%s983_s1 + $0x64] sm:$0xf0] }
   0x3   :  { %v473_v7 = vor.u32 %v616_v2, %v470_v4  ;;  %v614_v8 = vld [vmem:[%s983_s1 + $0x64] sm:$0xf]  ;;  %v462_v9 = vld [vmem:[%s983_s1 + $0x68] sm:$0xf0]  ;;  %v461_v10 = vor.u32 %v615_v6, %v460_v5  ;;  %v452_v12 = vld [vmem:[%s983_s1 + $0x50] sm:$0xf] }
   0x4   :  { %124 = vmatpush.bf16.msra.mxu0 %v469_v3  ;;  %v465_v11 = vor.u32 %v614_v8, %v462_v9  ;;  %v613_v13 = vld [vmem:[%s983_s1 + $0x54] sm:$0xf0]  ;;  %v612_v14 = vld [vmem:[%s983_s1 + $0x54] sm:$0xf]  ;;  %v454_v15 = vld [vmem:[%s983_s1 + $0x58] sm:$0xf0] }
   0x5   :  { %137 = vmatpush.bf16.msra.mxu1 %v473_v7  ;;  %v453_v16 = vor.u32 %v613_v13, %v452_v12  ;;  %v457_v17 = vor.u32 %v612_v14, %v454_v15  ;;  %v444_v18 = vld [vmem:[%s983_s1 + $0x40] sm:$0xf]  ;;  %v611_v19 = vld [vmem:[%s983_s1 + $0x44] sm:$0xf0]  ;;  %v610_v20 = vld [vmem:[%s983_s1 + $0x44] sm:$0xf] }
   0x6   :  { %v446_v21 = vld [vmem:[%s983_s1 + $0x48] sm:$0xf0]  ;;  %v445_v22 = vor.u32 %v611_v19, %v444_v18  ;;  %v532_v23 = vld [vmem:[%s984_s3 + $0x70] sm:$0xf]  ;;  %v633_v24 = vld [vmem:[%s984_s3 + $0x74] sm:$0xf0] }
   0x7   :  { %v596_v25 = vld [vmem:[%s984_s3 + $0xf0] sm:$0xf]  ;;  %v449_v26 = vor.u32 %v610_v20, %v446_v21  ;;  %v609_v28 = vld [vmem:[%s983_s1 + $0x34] sm:$0xf0]  ;;  %v533_v29 = vor.u32 %v633_v24, %v532_v23  ;;  %v608_v31 = vld [vmem:[%s983_s1 + $0x34] sm:$0xf] }
   0x8   :  { %125 = vmatpush.bf16.msra.mxu0 %v461_v10  ;;  %v436_v27 = vld [vmem:[%s983_s1 + $0x30] sm:$0xf]  ;;  %v649_v30 = vld [vmem:[%s984_s3 + $0xf4] sm:$0xf0]  ;;  %v438_v32 = vld [vmem:[%s983_s1 + $0x38] sm:$0xf0] }
   0x9   :  { %138 = vmatpush.bf16.msra.mxu1 %v465_v11  ;;  %v597_v33 = vor.u32 %v649_v30, %v596_v25  ;;  %v524_v34 = vld [vmem:[%s984_s3 + $0x60] sm:$0xf]  ;;  %352 = vmatpush.bf16.msra.mxu2 %v533_v29  ;;  %v631_v35 = vld [vmem:[%s984_s3 + $0x64] sm:$0xf0]  ;;  %v437_v38 = vor.u32 %v609_v28, %v436_v27  ;;  %v441_v43 = vor.u32 %v608_v31, %v438_v32  ;;  %v606_v44 = vld [vmem:[%s983_s1 + $0x24] sm:$0xf] }
   0xa   :  { %v588_v36 = vld [vmem:[%s984_s3 + $0xe0] sm:$0xf]  ;;  %v647_v37 = vld [vmem:[%s984_s3 + $0xe4] sm:$0xf0]  ;;  %v525_v41 = vor.u32 %v631_v35, %v524_v34  ;;  %v516_v45 = vld [vmem:[%s984_s3 + $0x50] sm:$0xf] }
   0xb   :  { %v428_v39 = vld [vmem:[%s983_s1 + $0x20] sm:$0xf]  ;;  %v607_v40 = vld [vmem:[%s983_s1 + $0x24] sm:$0xf0]  ;;  %365 = vmatpush.bf16.msra.mxu3 %v597_v33  ;;  %v589_v42 = vor.u32 %v647_v37, %v588_v36  ;;  %v629_v46 = vld [vmem:[%s984_s3 + $0x54] sm:$0xf0] }
   0xc   :  { %126 = vmatpush.bf16.msra.mxu0 %v453_v16  ;;  %v430_v47 = vld [vmem:[%s983_s1 + $0x28] sm:$0xf0]  ;;  %v580_v48 = vld [vmem:[%s984_s3 + $0xd0] sm:$0xf]  ;;  %v645_v49 = vld [vmem:[%s984_s3 + $0xd4] sm:$0xf0]  ;;  %v517_v50 = vor.u32 %v629_v46, %v516_v45  ;;  %v429_v51 = vor.u32 %v607_v40, %v428_v39 }
   0xd   :  { %139 = vmatpush.bf16.msra.mxu1 %v457_v17  ;;  %353 = vmatpush.bf16.msra.mxu2 %v525_v41  ;;  %v420_v52 = vld [vmem:[%s983_s1 + $0x10] sm:$0xf]  ;;  %v581_v53 = vor.u32 %v645_v49, %v580_v48  ;;  %v508_v54 = vld [vmem:[%s984_s3 + $0x40] sm:$0xf]  ;;  %v627_v55 = vld [vmem:[%s984_s3 + $0x44] sm:$0xf0]  ;;  %v433_v56 = vor.u32 %v606_v44, %v430_v47 }
   0xe   :  { %v605_v57 = vld [vmem:[%s983_s1 + $0x14] sm:$0xf0]  ;;  %v572_v58 = vld [vmem:[%s984_s3 + $0xc0] sm:$0xf]  ;;  %v643_v59 = vld [vmem:[%s984_s3 + $0xc4] sm:$0xf0]  ;;  %v509_v63 = vor.u32 %v627_v55, %v508_v54 }
   0xf   :  { %366 = vmatpush.bf16.msra.mxu3 %v589_v42  ;;  %v604_v60 = vld [vmem:[%s983_s1 + $0x14] sm:$0xf]  ;;  %v422_v61 = vld [vmem:[%s983_s1 + $0x18] sm:$0xf0]  ;;  %v412_v62 = vld [vmem:[%s983_s1] sm:$0xf]  ;;  %v421_v0 = vor.u32 %v605_v57, %v420_v52  ;;  %v573_v2 = vor.u32 %v643_v59, %v572_v58 }
  0x10   :  { %127 = vmatpush.bf16.msra.mxu0 %v445_v22  ;;  %v603_v1 = vld [vmem:[%s983_s1 + $0x4] sm:$0xf0]  ;;  %v500_v3 = vld [vmem:[%s984_s3 + $0x30] sm:$0xf]  ;;  %v625_v4 = vld [vmem:[%s984_s3 + $0x34] sm:$0xf0]  ;;  %v425_v5 = vor.u32 %v604_v60, %v422_v61 }
  0x11   :  { %140 = vmatpush.bf16.msra.mxu1 %v449_v26  ;;  %354 = vmatpush.bf16.msra.mxu2 %v517_v50  ;;  %v602_v6 = vld [vmem:[%s983_s1 + $0x4] sm:$0xf]  ;;  %v564_v7 = vld [vmem:[%s984_s3 + $0xb0] sm:$0xf]  ;;  %v641_v8 = vld [vmem:[%s984_s3 + $0xb4] sm:$0xf0]  ;;  %v501_v14 = vor.u32 %v625_v4, %v500_v3  ;;  %v413_v15 = vor.u32 %v603_v1, %v412_v62 }
  0x12   :  { %v414_v9 = vld [vmem:[%s983_s1 + $0x8] sm:$0xf0]  ;;  %v632_v10 = vld [vmem:[%s984_s3 + $0x74] sm:$0xf]  ;;  %v534_v11 = vld [vmem:[%s984_s3 + $0x78] sm:$0xf0]  ;;  %v565_v17 = vor.u32 %v641_v8, %v564_v7 }
  0x13   :  { %367 = vmatpush.bf16.msra.mxu3 %v581_v53  ;;  %v648_v12 = vld [vmem:[%s984_s3 + $0xf4] sm:$0xf]  ;;  %v598_v13 = vld [vmem:[%s984_s3 + $0xf8] sm:$0xf0]  ;;  %v20_v16 = vld [vmem:[%s985_s0] sm:$0xff]  ;;  %v417_v20 = vor.u32 %v602_v6, %v414_v9  ;;  %v537_v21 = vor.u32 %v632_v10, %v534_v11 }
  0x14   :  { %128 = vmatpush.bf16.msra.mxu0 %v437_v38  ;;  %v492_v18 = vld [vmem:[%s984_s3 + $0x20] sm:$0xf]  ;;  %v623_v19 = vld [vmem:[%s984_s3 + $0x24] sm:$0xf0]  ;;  %v601_v24 = vor.u32 %v648_v12, %v598_v13  ;;  %v630_v25 = vld [vmem:[%s984_s3 + $0x64] sm:$0xf]  ;;  %v21_v27 = vpack.c.bf16 %v20_v16, %v20_v16 }
  0x15   :  { %141 = vmatpush.bf16.msra.mxu1 %v441_v43  ;;  %355 = vmatpush.bf16.msra.mxu2 %v509_v63  ;;  %v556_v22 = vld [vmem:[%s984_s3 + $0xa0] sm:$0xf]  ;;  %v639_v23 = vld [vmem:[%s984_s3 + $0xa4] sm:$0xf0]  ;;  %v526_v26 = vld [vmem:[%s984_s3 + $0x68] sm:$0xf0]  ;;  %v493_v30 = vor.u32 %v623_v19, %v492_v18 }
  0x16   :  { %v646_v28 = vld [vmem:[%s984_s3 + $0xe4] sm:$0xf]  ;;  %v590_v29 = vld [vmem:[%s984_s3 + $0xe8] sm:$0xf0]  ;;  %v557_v31 = vor.u32 %v639_v23, %v556_v22  ;;  %v529_v32 = vor.u32 %v630_v25, %v526_v26  ;;  %v628_v34 = vld [vmem:[%s984_s3 + $0x54] sm:$0xf] }
  0x17   :  { %368 = vmatpush.bf16.msra.mxu3 %v573_v2  ;;  %v593_v33 = vor.u32 %v646_v28, %v590_v29  ;;  %v518_v35 = vld [vmem:[%s984_s3 + $0x58] sm:$0xf0]  ;;  %v644_v36 = vld [vmem:[%s984_s3 + $0xd4] sm:$0xf]  ;;  %v626_v40 = vld [vmem:[%s984_s3 + $0x44] sm:$0xf] }
  0x18   :  { %129 = vmatpush.bf16.msra.mxu0 %v429_v51  ;;  %v582_v37 = vld [vmem:[%s984_s3 + $0xd8] sm:$0xf0]  ;;  %v521_v38 = vor.u32 %v628_v34, %v518_v35  ;;  %v510_v41 = vld [vmem:[%s984_s3 + $0x48] sm:$0xf0]  ;;  %v642_v42 = vld [vmem:[%s984_s3 + $0xc4] sm:$0xf] }
  0x19   :  { %142 = vmatpush.bf16.msra.mxu1 %v433_v56  ;;  %356 = vmatpush.bf16.msra.mxu2 %v501_v14  ;;  %v585_v39 = vor.u32 %v644_v36, %v582_v37  ;;  %v574_v43 = vld [vmem:[%s984_s3 + $0xc8] sm:$0xf0]  ;;  %v513_v44 = vor.u32 %v626_v40, %v510_v41  ;;  %v624_v46 = vld [vmem:[%s984_s3 + $0x34] sm:$0xf]  ;;  %v502_v47 = vld [vmem:[%s984_s3 + $0x38] sm:$0xf0] }
  0x1a   :  { %v577_v45 = vor.u32 %v642_v42, %v574_v43  ;;  %v640_v48 = vld [vmem:[%s984_s3 + $0xb4] sm:$0xf]  ;;  %v566_v49 = vld [vmem:[%s984_s3 + $0xb8] sm:$0xf0]  ;;  %v505_v50 = vor.u32 %v624_v46, %v502_v47  ;;  %v622_v52 = vld [vmem:[%s984_s3 + $0x24] sm:$0xf] }
  0x1b   :  { %369 = vmatpush.bf16.msra.mxu3 %v565_v17  ;;  %v569_v51 = vor.u32 %v640_v48, %v566_v49  ;;  %v494_v53 = vld [vmem:[%s984_s3 + $0x28] sm:$0xf0]  ;;  %v638_v54 = vld [vmem:[%s984_s3 + $0xa4] sm:$0xf]  ;;  %v484_v58 = vld [vmem:[%s984_s3 + $0x10] sm:$0xf] }
  0x1c   :  { %130 = vmatpush.bf16.msra.mxu0 %v421_v0  ;;  %v558_v55 = vld [vmem:[%s984_s3 + $0xa8] sm:$0xf0]  ;;  %v497_v56 = vor.u32 %v622_v52, %v494_v53  ;;  %v621_v59 = vld [vmem:[%s984_s3 + $0x14] sm:$0xf0]  ;;  %v548_v60 = vld [vmem:[%s984_s3 + $0x90] sm:$0xf] }
  0x1d   :  { %143 = vmatpush.bf16.msra.mxu1 %v425_v5  ;;  %357 = vmatpush.bf16.msra.mxu2 %v493_v30  ;;  %v561_v57 = vor.u32 %v638_v54, %v558_v55  ;;  %v485_v61 = vor.u32 %v621_v59, %v484_v58  ;;  %v637_v62 = vld [vmem:[%s984_s3 + $0x94] sm:$0xf0]  ;;  %v620_v63 = vld [vmem:[%s984_s3 + $0x14] sm:$0xf]  ;;  %v486_v0 = vld [vmem:[%s984_s3 + $0x18] sm:$0xf0] }
  0x1e   :  { %v549_v1 = vor.u32 %v637_v62, %v548_v60  ;;  %v489_v2 = vor.u32 %v620_v63, %v486_v0  ;;  %v636_v3 = vld [vmem:[%s984_s3 + $0x94] sm:$0xf]  ;;  %v550_v4 = vld [vmem:[%s984_s3 + $0x98] sm:$0xf0]  ;;  %v476_v6 = vld [vmem:[%s984_s3] sm:$0xf] }
  0x1f   :  { %370 = vmatpush.bf16.msra.mxu3 %v557_v31  ;;  %v553_v5 = vor.u32 %v636_v3, %v550_v4  ;;  %v619_v7 = vld [vmem:[%s984_s3 + $0x4] sm:$0xf0]  ;;  %v540_v8 = vld [vmem:[%s984_s3 + $0x80] sm:$0xf]  ;;  %v618_v11 = vld [vmem:[%s984_s3 + $0x4] sm:$0xf] }
  0x20   :  { %131 = vmatpush.bf16.msra.mxu0 %v413_v15  ;;  %v477_v9 = vor.u32 %v619_v7, %v476_v6  ;;  %v635_v10 = vld [vmem:[%s984_s3 + $0x84] sm:$0xf0]  ;;  %v478_v12 = vld [vmem:[%s984_s3 + $0x8] sm:$0xf0]  ;;  %v634_v15 = vld [vmem:[%s984_s3 + $0x84] sm:$0xf] }
  0x21   :  { %144 = vmatpush.bf16.msra.mxu1 %v417_v20  ;;  %358 = vmatpush.bf16.msra.mxu2 %v485_v61  ;;  %v541_v13 = vor.u32 %v635_v10, %v540_v8  ;;  %v481_v14 = vor.u32 %v618_v11, %v478_v12  ;;  %v542_v16 = vld [vmem:[%s984_s3 + $0x88] sm:$0xf0]  ;;  %v38_v18 = vld [vmem:[%s986_s2] sm:$0x3] }
  0x22   :  { %v545_v17 = vor.u32 %v634_v15, %v542_v16  ;;  %v40_v19 = vperm.slane %v38_v18, 0  ;;  %v41_v20 = vperm.slane %v38_v18, 1  ;;  %v186_v31 = vld [vmem:[%s987_s4] sm:$0x3] }
  0x23   :  { %132 = vmatmul.bf16.vlgmr.msra.gmra.mxu0 %v21_v27  ;;  %371 = vmatpush.bf16.msra.mxu3 %v549_v1  ;;  %v188_v37 = vperm.slane %v186_v31, 0 }
  0x24   :  { %378 = vmatpush.bf16.msrb.mxu0 %v537_v21  ;;  %145 = vmatmul.bf16.vlgmr.msra.gmra.mxu1 %v21_v27 }
  0x25   :  { %391 = vmatpush.bf16.msrb.mxu1 %v601_v24  ;;  %359 = vmatpush.bf16.msra.mxu2 %v477_v9 }
  0x27   :  { %372 = vmatpush.bf16.msra.mxu3 %v541_v13 }
  0x28   :  { %379 = vmatpush.bf16.msrb.mxu0 %v529_v32  ;;  %v189_v32 = vperm.slane %v186_v31, 1 }
  0x29   :  { %392 = vmatpush.bf16.msrb.mxu1 %v593_v33 }
  0x2c   :  { %380 = vmatpush.bf16.msrb.mxu0 %v521_v38 }
  0x2d   :  { %393 = vmatpush.bf16.msrb.mxu1 %v585_v39 }
  0x30   :  { %381 = vmatpush.bf16.msrb.mxu0 %v513_v44 }
  0x31   :  { %394 = vmatpush.bf16.msrb.mxu1 %v577_v45 }
  0x34   :  { %382 = vmatpush.bf16.msrb.mxu0 %v505_v50 }
  0x35   :  { %395 = vmatpush.bf16.msrb.mxu1 %v569_v51 }
  0x38   :  { %383 = vmatpush.bf16.msrb.mxu0 %v497_v56 }
  0x39   :  { %396 = vmatpush.bf16.msrb.mxu1 %v561_v57 }
  0x3c   :  { %384 = vmatpush.bf16.msrb.mxu0 %v489_v2 }
  0x3d   :  { %397 = vmatpush.bf16.msrb.mxu1 %v553_v5 }
  0x40   :  { %385 = vmatpush.bf16.msrb.mxu0 %v481_v14 }
  0x41   :  { %398 = vmatpush.bf16.msrb.mxu1 %v545_v17 }
  0xa0   :  { %v133_v21 = vpop.f32.mrf.mxu0 }
  0xa1   :  { %v134_v22 = vadd.f32 %v133_v21, %v40_v19  ;;  %v146_v23 = vpop.f32.mrf.mxu1 }
  0xa2   :  { %v147_v24 = vadd.f32 %v146_v23, %v41_v20 }
  0xa3   :  { %v150_v25 = vmax.f32 %v134_v22, 0.0 }
  0xa4   :  { %v151_v26 = vmax.f32 %v147_v24, 0.0 }
  0xa5   :  { %v152_v27 = vpack.c.bf16 %v150_v25, %v150_v25 }
  0xa6   :  { %v153_v28 = vpack.c.bf16 %v151_v26, %v151_v26 }
  0xa7   :  { %360 = vmatmul.bf16.vlgmr.msra.gmra.mxu2 %v152_v27  ;;  %386 = vmatmul.bf16.vlgmr.msrb.gmra.mxu0 %v152_v27 }
  0xa8   :  { %373 = vmatmul.bf16.vlgmr.msra.gmra.mxu3 %v153_v28  ;;  %399 = vmatmul.bf16.vlgmr.msrb.gmra.mxu1 %v153_v28  ;;  %v135_v29 = vpop.f32.mrf.mxu0 }
  0xa9   :  { %v148_v30 = vpop.f32.mrf.mxu1 }
 0x124   :  { %v387_v33 = vpop.f32.mrf.mxu0 }
 0x125   :  { %v388_v34 = vadd.f32 %v387_v33, %v189_v32  ;;  %v400_v35 = vpop.f32.mrf.mxu1 }
 0x127   :  { %v401_v36 = vadd.f32 %v400_v35, %v388_v34 }
 0x129   :  { %405 = vst [vmem:[%s988_s5 + $0x8] sm:$0xff] %v401_v36 }
 0x12a   :  { %v361_v38 = vpop.f32.mrf.mxu2 }
 0x12b   :  { %v362_v39 = vadd.f32 %v361_v38, %v188_v37  ;;  %v374_v40 = vpop.f32.mrf.mxu3 }
 0x12c   :  { %v389_v41 = vpop.f32.mrf.mxu0 }
 0x12d   :  { %v375_v42 = vadd.f32 %v374_v40, %v362_v39  ;;  %v402_v43 = vpop.f32.mrf.mxu1 }
 0x12f   :  { %404 = vst [vmem:[%s988_s5] sm:$0xff] %v375_v42 }
 0x132   :  { %v363_v44 = vpop.f32.mrf.mxu2 }
 0x133   :  { %v376_v45 = vpop.f32.mrf.mxu3 }

</bundles_post_ra>
